<compile_context>
chip_gen: v6e
topology: v6e:2x2x1
jax: 0.10.0
libtpu: 0.0.40
codegen_flags: <defaults>
</compile_context>

<pallas_src>
import math
from functools import partial

import jax
import jax.numpy as jnp
from jax.experimental import pallas as pl
from jax.experimental.pallas import tpu as pltpu

MIN_EXPERT_CAPACITY = 4


def _round_up(x, m):
    return ((x + m - 1) // m) * m


def _cdiv(a, b):
    return -(-a // b)


def _vmem_capacity_bytes():
    """Physical VMEM per TensorCore; conservative 64 MiB fallback (v7x)."""
    try:
        info = pltpu.get_tpu_info()
        cap = int(getattr(info, "vmem_capacity_bytes"))
        if cap > 0:
            return cap
    except Exception:
        pass
    return 64 * 1024 * 1024


# ----------------------------------------------------------------------------
# Pallas kernels: per-expert 2-layer MLP  (out = ReLU(x @ w1) @ w2)
# ----------------------------------------------------------------------------
def _expert_mlp_kernel_resident(x_ref, w1_ref, w2_ref, o_ref):
    # Full per-expert weights are VMEM-resident: no hidden-reduction axis,
    # no accumulator scratch needed.
    # x_ref : (1, TN, Dp) bf16   w1_ref: (1, Dp, Hp) bf16
    # w2_ref: (1, Hp, Dop) bf16  o_ref : (1, TN, Dop) bf16
    h = jnp.dot(x_ref[0], w1_ref[0], preferred_element_type=jnp.float32)
    h = jnp.maximum(h, 0.0)  # ReLU on the f32 intermediate
    o_ref[0] = jnp.dot(
        h.astype(w2_ref.dtype), w2_ref[0], preferred_element_type=jnp.float32
    ).astype(o_ref.dtype)


def _expert_mlp_kernel_tiled(x_ref, w1_ref, w2_ref, o_ref, acc_ref):
    # Fallback when the full weights do not fit in VMEM: the hidden dim is
    # tiled as an innermost "arbitrary" reduction axis with an f32 VMEM acc.
    # x_ref : (1, TN, Dp)  bf16     w1_ref: (1, Dp, TH)  bf16
    # w2_ref: (1, TH, Dop) bf16     o_ref : (1, TN, Dop) bf16
    # acc_ref: (TN, Dop) f32 scratch
    h_idx = pl.program_id(2)

    h = jnp.dot(x_ref[0], w1_ref[0], preferred_element_type=jnp.float32)
    h = jnp.maximum(h, 0.0)
    contrib = jnp.dot(
        h.astype(w2_ref.dtype), w2_ref[0], preferred_element_type=jnp.float32
    )

    # Skip the explicit zero-init pass: write at h==0, accumulate afterwards.
    @pl.when(h_idx == 0)
    def _():
        acc_ref[...] = contrib

    @pl.when(h_idx > 0)
    def _():
        acc_ref[...] += contrib

    @pl.when(h_idx == pl.num_programs(2) - 1)
    def _():
        o_ref[0] = acc_ref[...].astype(o_ref.dtype)


def experts_pallas(x, w1, w2, *, tn_target=None, th_target=None):
    """x: (E, N, D), w1: (E, D, H), w2: (E, H, Do) -> (E, N, Do) bf16."""
    E, N, D = x.shape
    H = w1.shape[-1]
    Do = w2.shape[-1]

    vmem_cap = _vmem_capacity_bytes()
    budget = int(0.75 * vmem_cap)       # decision budget (headroom for Mosaic)
    big_vmem = vmem_cap >= (100 << 20)  # v5e / v6e: 128 MiB per TC

    if tn_target is None:
        tn_target = 512 if big_vmem else 256
    if th_target is None:
        th_target = 1024 if big_vmem else 512

    # Lane-dense padding (zeros are exact no-ops through relu + matmul).
    Dp = _round_up(D, 128)
    Dop = _round_up(Do, 128)
    Hp = _round_up(H, 128)

    # Token tile: multiple of 16 (bf16 sublane packing).
    TN = min(tn_target, _round_up(N, 16))
    Np = _round_up(N, TN)
    n_tiles = Np // TN

    def _vmem_need(th, with_acc):
        need = (
            2 * TN * Dp * 2        # x tile (bf16), double-buffered
            + 2 * Dp * th * 2      # w1 tile (bf16), double-buffered
            + 2 * th * Dop * 2     # w2 tile (bf16), double-buffered
            + 2 * TN * Dop * 2     # out tile (bf16), double-buffered
            + TN * th * 4          # f32 hidden intermediate
            + TN * th * 2          # bf16 re-cast of the intermediate
        )
        if with_acc:
            need += TN * Dop * 4   # f32 accumulator scratch
        return need

    # Preferred path: whole per-expert weights VMEM-resident (h_tiles == 1).
    weights_resident = _vmem_need(Hp, with_acc=False) <= budget

    if weights_resident:
        TH = Hp
        Hpad = Hp
        h_tiles = 1
    else:
        # Pick TH as an (approximate) even divisor of Hp instead of rounding
        # Hp up to a multiple of th_target.
        n_h = _cdiv(Hp, th_target)
        TH = _round_up(_cdiv(Hp, n_h), 128)
        while TH > 128 and _vmem_need(TH, with_acc=True) > budget:
            TH = _round_up(TH // 2, 128)
        Hpad = _round_up(Hp, TH)
        h_tiles = Hpad // TH
        # TODO(synk): for very large Do also tile the output-feature dim (Dop)
        # as an extra parallel grid axis so v7x (64 MiB/TC) never spills.

    # Cast + pad at the boundary (x is typically already bf16 -> cast is a
    # no-op; w1/w2 are constants per forward pass so this runs once per call).
    xp = jnp.pad(x.astype(jnp.bfloat16), ((0, 0), (0, Np - N), (0, Dp - D)))
    w1p = jnp.pad(w1.astype(jnp.bfloat16), ((0, 0), (0, Dp - D), (0, Hpad - H)))
    w2p = jnp.pad(w2.astype(jnp.bfloat16), ((0, 0), (0, Hpad - H), (0, Dop - Do)))

    # Advisory cost estimate (helps XLA overlap the surrounding glue ops).
    flops = 2 * E * Np * (Dp * Hpad + Hpad * Dop)
    weight_stream = 1 if weights_resident else n_tiles
    bytes_accessed = (
        E * Np * Dp * 2                                   # activations in (bf16)
        + weight_stream * E * (Dp * Hpad + Hpad * Dop) * 2  # weights
        + E * Np * Dop * 2                                # output (bf16)
    )
    cost = pl.CostEstimate(
        flops=int(flops), transcendentals=0, bytes_accessed=int(bytes_accessed)
    )

    need = _vmem_need(TH, with_acc=not weights_resident)
    vmem_limit = int(
        min(max(need * 3 // 2, 32 * 1024 * 1024), int(0.9 * vmem_cap))
    )

    if weights_resident:
        grid = (E, n_tiles)
        in_specs = [
            pl.BlockSpec((1, TN, Dp), lambda e, n: (e, n, 0)),
            # Constant block index across the n axis -> no weight re-stream.
            pl.BlockSpec((1, Dp, TH), lambda e, n: (e, 0, 0)),
            pl.BlockSpec((1, TH, Dop), lambda e, n: (e, 0, 0)),
        ]
        out_specs = pl.BlockSpec((1, TN, Dop), lambda e, n: (e, n, 0))
        scratch_shapes = []
        kernel = _expert_mlp_kernel_resident
        dims = ("parallel", "parallel")
    else:
        grid = (E, n_tiles, h_tiles)
        in_specs = [
            pl.BlockSpec((1, TN, Dp), lambda e, n, h: (e, n, 0)),
            pl.BlockSpec((1, Dp, TH), lambda e, n, h: (e, 0, h)),
            pl.BlockSpec((1, TH, Dop), lambda e, n, h: (e, h, 0)),
        ]
        out_specs = pl.BlockSpec((1, TN, Dop), lambda e, n, h: (e, n, 0))
        scratch_shapes = [pltpu.VMEM((TN, Dop), jnp.float32)]
        kernel = _expert_mlp_kernel_tiled
        dims = ("parallel", "parallel", "arbitrary")

    out = pl.pallas_call(
        kernel,
        out_shape=jax.ShapeDtypeStruct((E, Np, Dop), jnp.bfloat16),
        grid_spec=pltpu.PrefetchScalarGridSpec(
            num_scalar_prefetch=0,
            grid=grid,
            in_specs=in_specs,
            out_specs=out_specs,
            scratch_shapes=scratch_shapes,
        ),
        compiler_params=pltpu.CompilerParams(
            dimension_semantics=dims,
            vmem_limit_bytes=vmem_limit,
        ),
        cost_estimate=cost,
    )(xp, w1p, w2p)

    # Slice the zero padding back off; keep bf16 (combine einsums promote).
    return out[:, :N, :Do]


# ----------------------------------------------------------------------------
# Top-2 gating (plain JAX glue; matches Top2Gating.forward in training mode,
# kept in f32 because it relies on exact 0/1 arithmetic).
# ----------------------------------------------------------------------------
def _cumsum_exclusive(t, axis=-2):
    # values are 0/1 floats, so inclusive-cumsum minus self is exact
    return jnp.cumsum(t, axis=axis) - t


def top2_gating(
    x,
    w_gating,
    key,
    *,
    num_gates,
    importance=None,
    policy="random",        # second_policy_train
    threshold=0.2,          # second_threshold_train
    capacity_factor=1.25,   # capacity_factor_train
    eps=1e-9,
):
    # x: (..., b, n, d) with ndim >= 3
    *_, b, group_size, dim = x.shape
    dtype = x.dtype

    raw_gates = jnp.einsum("...bnd,...de->...bne", x, w_gating)
    raw_gates = jax.nn.softmax(raw_gates, axis=-1)

    index_1 = jnp.argmax(raw_gates, axis=-1)
    gate_1 = jnp.max(raw_gates, axis=-1)
    mask_1 = jax.nn.one_hot(index_1, num_gates, dtype=dtype)
    density_1_proxy = raw_gates

    # NOTE: the reference Top2Gating contains a stray `pdb.set_trace()` debug
    # artifact; it is dropped here.
    if importance is not None:
        eq_one = (importance == 1.0).astype(dtype)
        mask_1 = mask_1 * eq_one[..., None]
        gate_1 = gate_1 * eq_one
        density_1_proxy = density_1_proxy * eq_one[..., None]

    gates_without_top_1 = raw_gates * (1.0 - mask_1)
    index_2 = jnp.argmax(gates_without_top_1, axis=-1)
    gate_2 = jnp.max(gates_without_top_1, axis=-1)
    mask_2 = jax.nn.one_hot(index_2, num_gates, dtype=dtype)

    if importance is not None:
        gt_zero = (importance > 0.0).astype(dtype)
        mask_2 = mask_2 * gt_zero[..., None]

    denom = gate_1 + gate_2 + eps
    gate_1 = gate_1 / denom
    gate_2 = gate_2 / denom

    density_1 = mask_1.mean(axis=-2)
    density_1_proxy = density_1_proxy.mean(axis=-2)
    loss = (density_1_proxy * density_1).mean() * float(num_gates ** 2)

    if policy == "all":
        pass
    elif policy == "none":
        mask_2 = jnp.zeros_like(mask_2)
    elif policy == "threshold":
        mask_2 = mask_2 * (gate_2 > threshold).astype(dtype)[..., None]
    elif policy == "random":
        probs = jax.random.uniform(key, gate_2.shape, dtype=dtype)
        mask_2 = mask_2 * (
            probs < (gate_2 / max(threshold, eps))
        ).astype(dtype)[..., None]
    else:
        raise ValueError(f"Unknown policy {policy}")

    expert_capacity = min(group_size, int(group_size * capacity_factor / num_gates))
    expert_capacity = max(expert_capacity, MIN_EXPERT_CAPACITY)
    expert_capacity_f = float(expert_capacity)

    position_in_expert_1 = _cumsum_exclusive(mask_1, axis=-2) * mask_1
    mask_1 = mask_1 * (position_in_expert_1 < expert_capacity_f).astype(dtype)
    mask_1_count = mask_1.sum(axis=-2, keepdims=True)
    mask_1_flat = mask_1.sum(axis=-1)
    position_in_expert_1 = position_in_expert_1.sum(axis=-1)
    gate_1 = gate_1 * mask_1_flat

    position_in_expert_2 = _cumsum_exclusive(mask_2, axis=-2) + mask_1_count
    position_in_expert_2 = position_in_expert_2 * mask_2
    mask_2 = mask_2 * (position_in_expert_2 < expert_capacity_f).astype(dtype)
    mask_2_flat = mask_2.sum(axis=-1)
    position_in_expert_2 = position_in_expert_2.sum(axis=-1)
    gate_2 = gate_2 * mask_2_flat

    one_hot_g1 = jax.nn.one_hot(index_1, num_gates, dtype=dtype)
    one_hot_g2 = jax.nn.one_hot(index_2, num_gates, dtype=dtype)
    # safe_one_hot: out-of-range positions map to an all-zero row (jax.nn.one_hot default)
    one_hot_p1 = jax.nn.one_hot(
        position_in_expert_1.astype(jnp.int32), expert_capacity, dtype=dtype
    )
    one_hot_p2 = jax.nn.one_hot(
        position_in_expert_2.astype(jnp.int32), expert_capacity, dtype=dtype
    )

    combine_tensor = (
        gate_1[..., None, None]
        * mask_1_flat[..., None, None]
        * one_hot_g1[..., None]
        * one_hot_p1[..., None, :]
        + gate_2[..., None, None]
        * mask_2_flat[..., None, None]
        * one_hot_g2[..., None]
        * one_hot_p2[..., None, :]
    )
    dispatch_tensor = (combine_tensor != 0).astype(combine_tensor.dtype)
    return dispatch_tensor, combine_tensor, loss


# ----------------------------------------------------------------------------
# HierarchicalMoE forward
# ----------------------------------------------------------------------------
def hierarchical_moe_forward(
    inputs, w_gate_outer, w_gate_inner, w1, w2, *, rng_key, loss_coef=0.01
):
    d = inputs.shape[-1]
    eo, ei = w1.shape[0], w1.shape[1]
    hidden = w1.shape[-1]
    out_dim = w2.shape[-1]
    k_outer, k_inner = jax.random.split(rng_key)

    disp_o, comb_o, loss_outer = top2_gating(
        inputs, w_gate_outer, k_outer, num_gates=eo
    )

    if inputs.ndim < 3:
        inputs = inputs[:, None, :]
        disp_o = disp_o[:, None, ...]
        comb_o = comb_o[:, None, ...]

    # TODO(synk): for production sizes replace these dense one-hot dispatch /
    # combine einsums with sort/gather routing (or a scalar-prefetch grouped
    # matmul kernel) -- they dominate HBM traffic, not the expert MLP.
    # dispatch to outer experts: (eo, b, c_out, d)  (f32: feeds inner gating)
    expert_inputs_outer = jnp.einsum("bnd,bnec->ebcd", inputs, disp_o)

    importance = jnp.transpose(comb_o, (2, 0, 3, 1)).sum(axis=-1)
    importance = 0.5 * (
        (importance > 0.5).astype(jnp.float32)
        + (importance > 0.0).astype(jnp.float32)
    )

    disp_i, comb_i, loss_inner = top2_gating(
        expert_inputs_outer, w_gate_inner, k_inner, num_gates=ei, importance=importance
    )

    # dispatch to inner experts in bf16 (0/1 selection -> exact), so the
    # expert activations land in HBM as bf16 once: (eo, ei, b, c_in, d)
    expert_inputs = jnp.einsum(
        "ebnd,ebnfc->efbcd",
        expert_inputs_outer.astype(jnp.bfloat16),
        disp_i.astype(jnp.bfloat16),
    )
    orig_shape = expert_inputs.shape

    # ----- hot path: per-expert MLP via Pallas (bf16 in / bf16 out) -----
    flat_in = expert_inputs.reshape(eo * ei, -1, d)
    flat_w1 = w1.reshape(eo * ei, d, hidden)
    flat_w2 = w2.reshape(eo * ei, hidden, out_dim)
    flat_out = experts_pallas(flat_in, flat_w1, flat_w2)
    expert_outputs = flat_out.reshape(*orig_shape[:-1], out_dim)

    # combine back (bf16 outputs x f32 combine tensors -> f32 result)
    expert_outputs_outer = jnp.einsum("efbcd,ebnfc->ebnd", expert_outputs, comb_i)
    output = jnp.einsum("ebcd,bnec->bnd", expert_outputs_outer, comb_o)
    return output, (loss_outer + loss_inner) * loss_coef


# ----------------------------------------------------------------------------
# Driver
# ----------------------------------------------------------------------------
if __name__ == "__main__":
    key = jax.random.PRNGKey(0)
    k_x, k_go, k_gi, k_w1, k_w2, k_rt = jax.random.split(key, 6)

    # small shapes: batch=2, group(seq)=8, dim=16, experts=(4,4), hidden=4*dim
    b, n, d = 2, 8, 16
    eo, ei = 4, 4
    hidden = d * 4
    out_dim = d

    inputs = jax.random.normal(k_x, (b, n, d), dtype=jnp.float32)

    # gate weights: torch.randn
    w_gate_outer = jax.random.normal(k_go, (d, eo), dtype=jnp.float32)
    w_gate_inner = jax.random.normal(k_gi, (eo, d, ei), dtype=jnp.float32)

    # expert weights: uniform(-1/sqrt(last_dim), 1/sqrt(last_dim))
    std1 = 1.0 / math.sqrt(hidden)
    std2 = 1.0 / math.sqrt(out_dim)
    w1 = jax.random.uniform(
        k_w1, (eo, ei, d, hidden), dtype=jnp.float32, minval=-std1, maxval=std1
    )
    w2 = jax.random.uniform(
        k_w2, (eo, ei, hidden, out_dim), dtype=jnp.float32, minval=-std2, maxval=std2
    )

    fwd = jax.jit(partial(hierarchical_moe_forward, loss_coef=0.01))
    output, aux_loss = fwd(inputs, w_gate_outer, w_gate_inner, w1, w2, rng_key=k_rt)
    jax.block_until_ready((output, aux_loss))

    assert output.shape == (b, n, out_dim)
    assert aux_loss.shape == ()
    assert bool(jnp.all(jnp.isfinite(output)))
    print("KERNEL_OK")
</pallas_src>

<mosaic_0001>
module attributes {stable_mosaic.version = 11 : i64} {
  func.func @_expert_mlp_kernel_resident(%arg0: i32, %arg1: i32, %arg2: memref<1x16x128xbf16, #tpu.memory_space<vmem>>, %arg3: memref<1x128x128xbf16, #tpu.memory_space<vmem>>, %arg4: memref<1x128x128xbf16, #tpu.memory_space<vmem>>, %arg5: memref<1x16x128xbf16, #tpu.memory_space<vmem>>) attributes {dimension_semantics = [#tpu.dimension_semantics<parallel>, #tpu.dimension_semantics<parallel>], iteration_bounds = array<i64: 16, 1>, scalar_prefetch = 0 : i64, scratch_operands = 0 : i64, tpu.core_type = #tpu.core_type<tc>, window_params = [{transform_indices = @transform_0, window_bounds = array<i64: 1, 16, 128>}, {transform_indices = @transform_1, window_bounds = array<i64: 1, 128, 128>}, {transform_indices = @transform_2, window_bounds = array<i64: 1, 128, 128>}, {transform_indices = @transform_3, window_bounds = array<i64: 1, 16, 128>}]} {
    %c0 = arith.constant 0 : index
    %c0_0 = arith.constant 0 : index
    %c0_1 = arith.constant 0 : index
    %0 = vector.load %arg2[%c0, %c0_0, %c0_1] : memref<1x16x128xbf16, #tpu.memory_space<vmem>>, vector<1x16x128xbf16>
    %1 = vector.shape_cast %0 : vector<1x16x128xbf16> to vector<16x128xbf16>
    %c0_2 = arith.constant 0 : index
    %c0_3 = arith.constant 0 : index
    %c0_4 = arith.constant 0 : index
    %2 = vector.load %arg3[%c0_2, %c0_3, %c0_4] : memref<1x128x128xbf16, #tpu.memory_space<vmem>>, vector<1x128x128xbf16>
    %3 = vector.shape_cast %2 : vector<1x128x128xbf16> to vector<128x128xbf16>
    %cst = arith.constant dense<0.000000e+00> : vector<16x128xf32>
    %4 = tpu.matmul %1, %3, %cst {dimension_numbers = #tpu.dot_dimension_numbers<[1], [0], [0], [1], [0, 0, 1, 1], [], []>} : vector<16x128xbf16>, vector<128x128xbf16>, vector<16x128xf32> -> vector<16x128xf32>
    %cst_5 = arith.constant 0.000000e+00 : f32
    %5 = vector.broadcast %cst_5 : f32 to vector<16x128xf32>
    %6 = arith.maximumf %4, %5 : vector<16x128xf32>
    %7 = arith.truncf %6 : vector<16x128xf32> to vector<16x128xbf16>
    %c0_6 = arith.constant 0 : index
    %c0_7 = arith.constant 0 : index
    %c0_8 = arith.constant 0 : index
    %8 = vector.load %arg4[%c0_6, %c0_7, %c0_8] : memref<1x128x128xbf16, #tpu.memory_space<vmem>>, vector<1x128x128xbf16>
    %9 = vector.shape_cast %8 : vector<1x128x128xbf16> to vector<128x128xbf16>
    %cst_9 = arith.constant dense<0.000000e+00> : vector<16x128xf32>
    %10 = tpu.matmul %7, %9, %cst_9 {dimension_numbers = #tpu.dot_dimension_numbers<[1], [0], [0], [1], [0, 0, 1, 1], [], []>} : vector<16x128xbf16>, vector<128x128xbf16>, vector<16x128xf32> -> vector<16x128xf32>
    %11 = arith.truncf %10 : vector<16x128xf32> to vector<16x128xbf16>
    %c0_10 = arith.constant 0 : index
    %c0_11 = arith.constant 0 : index
    %c0_12 = arith.constant 0 : index
    %12 = vector.load %arg5[%c0_10, %c0_11, %c0_12] : memref<1x16x128xbf16, #tpu.memory_space<vmem>>, vector<1x16x128xbf16>
    %13 = vector.shape_cast %12 : vector<1x16x128xbf16> to vector<16x128xbf16>
    %14 = vector.shape_cast %11 : vector<16x128xbf16> to vector<1x16x128xbf16>
    tpu.vector_store %arg5[%c0_10, %c0_11, %c0_12], %14 {strides = array<i32>} : memref<1x16x128xbf16, #tpu.memory_space<vmem>>, vector<1x16x128xbf16>,
    return
  }
  func.func @transform_0(%arg0: i32, %arg1: i32) -> (i32, i32, i32) {
    %c0_i32 = arith.constant 0 : i32
    %c0_i32_0 = arith.constant 0 : i32
    return %arg0, %arg1, %c0_i32 : i32, i32, i32
  }
  func.func @transform_1(%arg0: i32, %arg1: i32) -> (i32, i32, i32) {
    %c0_i32 = arith.constant 0 : i32
    %c0_i32_0 = arith.constant 0 : i32
    %c0_i32_1 = arith.constant 0 : i32
    return %arg0, %c0_i32, %c0_i32_0 : i32, i32, i32
  }
  func.func @transform_2(%arg0: i32, %arg1: i32) -> (i32, i32, i32) {
    %c0_i32 = arith.constant 0 : i32
    %c0_i32_0 = arith.constant 0 : i32
    %c0_i32_1 = arith.constant 0 : i32
    return %arg0, %c0_i32, %c0_i32_0 : i32, i32, i32
  }
  func.func @transform_3(%arg0: i32, %arg1: i32) -> (i32, i32, i32) {
    %c0_i32 = arith.constant 0 : i32
    %c0_i32_0 = arith.constant 0 : i32
    return %arg0, %arg1, %c0_i32 : i32, i32, i32
  }
}

</mosaic_0001>

<bundles_post_ra>
// kernel: hierarchical_moe_forward.3
= control target key start
LH: loop header
LB: loop body
LE: loop exit
PB: predicated region body
PF: predicated region fallthrough
CT: control target
= control target key end

     0   :  { %s785_s12 = smov 0   ;;  %s787_s13 = smov 0   ;;  %s855_s0 = inlined_call_operand.vmem [shape: bf16[16,16,128], index: 0, kind: input, shape index: {}]   ;;  %s856_s1 = inlined_call_operand.vmem [shape: bf16[16,128,128], index: 1, kind: input, shape index: {}]   ;;  %s857_s2 = inlined_call_operand.vmem [shape: bf16[16,128,128], index: 2, kind: input, shape index: {}]   ;;  %s858_s3 = inlined_call_operand.vmem [shape: bf16[16,16,128], index: 3, kind: output, shape index: {}]  }
   0x1   :  { %s789_s14 = smov 0  }
   0x2 LB: > { %s25_s15 = sadd.s32 1, %s757_s13  ;;  %p597_p0 = scmp.ge.s32.totalorder %s761_s14, 1  ;;  %s761_s14 = sphi %s789_s14, %s13_s14   ;;  %s757_s13 = sphi %s787_s13, %s860_s13   ;;  %s753_s12 = sphi %s785_s12, %s859_s12  }
   0x3   : > { %p27_p1 = scmp.ge.s32.totalorder %s25_s15, 16  ;;  %p178_p2 = scmp.lt.s32.totalorder %s761_s14, 17 }
   0x5   : > { %s862_s15 = smov (%p27_p1, %s25_s15), 0  ;;  %p179_p3 = pnand %p597_p0, %p178_p2 }
   0x6   : > { %p221_p4 = scmp.lt.s32.totalorder (!%p179_p3), %s753_s12, 15 }
   0x7   : > { %182 = sbr.rel (%p179_p3) target bundleno = 448 (0x1c0), region = 32 }
   0xc   : > { %v763_v0 = vmov 0.0   ;;  %vm764_vm0 = vmmov 0   ;;  %s864_s12 = smov (!%p221_p4, %s753_s12), 15 }
   0xd   : > { %656 = vmatprep.subr.bf16.mxu0 %v763_v0  ;;  %672 = vmatprep.mubr.msk.bf16.mxu0 %vm764_vm0, %v763_v0  ;;  %s628_s16 = sshll.u32 %s864_s12, 6  ;;  %s627_s20 = sshll.u32 %s864_s12, 3 }
   0xe   : > { %676 = vmatprep.subr.bf16.mxu1 %v763_v0  ;;  %692 = vmatprep.mubr.msk.bf16.mxu1 %vm764_vm0, %v763_v0  ;;  %s809_s19 = scalar_lea.vmem %s856_s1, %s628_s16  ;;  %s818_s23 = scalar_lea.vmem %s857_s2, %s628_s16 }
   0xf   : > { %v722_v1 = vld [vmem:[%s809_s19 + $0x38] sm:$0xff]   ;;  %v723_v2 = vld [vmem:[%s809_s19 + $0x30] sm:$0xff]   ;;  %v724_v3 = vld [vmem:[%s809_s19 + $0x28] sm:$0xff]   ;;  %s825_s26 = scalar_lea.vmem %s855_s0, %s627_s20  ;;  %s248_s29 = scalar_lea.vmem %s858_s3, %s627_s20 }
  0x10   : > { %657 = vmatpush3.bf16.msra.mxu0 %v722_v1  ;;  %v731_v4 = vld [vmem:[%s818_s23 + $0x38] sm:$0xff]   ;;  %v725_v5 = vld [vmem:[%s809_s19 + $0x20] sm:$0xff]   ;;  %v732_v6 = vld [vmem:[%s818_s23 + $0x30] sm:$0xff]  }
  0x11   : > { %658 = vmatprep.subr.bf16.mxu0 %v763_v0  ;;  %677 = vmatpush3.bf16.msra.mxu1 %v731_v4  ;;  %v726_v7 = vld [vmem:[%s809_s19 + $0x18] sm:$0xff]   ;;  %v733_v8 = vld [vmem:[%s818_s23 + $0x28] sm:$0xff]   ;;  %v727_v9 = vld [vmem:[%s809_s19 + $0x10] sm:$0xff]  }
  0x12   : > { %678 = vmatprep.subr.bf16.mxu1 %v763_v0  ;;  %v734_v10 = vld [vmem:[%s818_s23 + $0x20] sm:$0xff]   ;;  %v728_v11 = vld [vmem:[%s809_s19 + $0x8] sm:$0xff]   ;;  %v735_v12 = vld [vmem:[%s818_s23 + $0x18] sm:$0xff]  }
  0x13   : > { %v729_v13 = vld [vmem:[%s809_s19] sm:$0xff]   ;;  %v736_v14 = vld [vmem:[%s818_s23 + $0x10] sm:$0xff]   ;;  %v737_v16 = vld [vmem:[%s818_s23 + $0x8] sm:$0xff]  }
  0x14   : > { %659 = vmatpush3.bf16.msra.mxu0 %v723_v2  ;;  %v730_v15 = vld [vmem:[%s825_s26] sm:$0xff]  }
  0x15   : > { %660 = vmatprep.subr.bf16.mxu0 %v763_v0  ;;  %679 = vmatpush3.bf16.msra.mxu1 %v732_v6  ;;  %v738_v17 = vld [vmem:[%s818_s23] sm:$0xff]  }
  0x16   : > { %680 = vmatprep.subr.bf16.mxu1 %v763_v0 }
  0x18   : > { %661 = vmatpush3.bf16.msra.mxu0 %v724_v3 }
  0x19   : > { %662 = vmatprep.subr.bf16.mxu0 %v763_v0  ;;  %681 = vmatpush3.bf16.msra.mxu1 %v733_v8 }
  0x1a   : > { %682 = vmatprep.subr.bf16.mxu1 %v763_v0 }
  0x1c   : > { %663 = vmatpush3.bf16.msra.mxu0 %v725_v5 }
  0x1d   : > { %664 = vmatprep.subr.bf16.mxu0 %v763_v0  ;;  %683 = vmatpush3.bf16.msra.mxu1 %v734_v10 }
  0x1e   : > { %684 = vmatprep.subr.bf16.mxu1 %v763_v0 }
  0x20   : > { %665 = vmatpush3.bf16.msra.mxu0 %v726_v7 }
  0x21   : > { %666 = vmatprep.subr.bf16.mxu0 %v763_v0  ;;  %685 = vmatpush3.bf16.msra.mxu1 %v735_v12 }
  0x22   : > { %686 = vmatprep.subr.bf16.mxu1 %v763_v0 }
  0x24   : > { %667 = vmatpush3.bf16.msra.mxu0 %v727_v9 }
  0x25   : > { %668 = vmatprep.subr.bf16.mxu0 %v763_v0  ;;  %687 = vmatpush3.bf16.msra.mxu1 %v736_v14 }
  0x26   : > { %688 = vmatprep.subr.bf16.mxu1 %v763_v0 }
  0x28   : > { %669 = vmatpush3.bf16.msra.mxu0 %v728_v11 }
  0x29   : > { %670 = vmatprep.subr.bf16.mxu0 %v763_v0  ;;  %689 = vmatpush3.bf16.msra.mxu1 %v737_v16 }
  0x2a   : > { %690 = vmatprep.subr.bf16.mxu1 %v763_v0 }
  0x2c   : > { %671 = vmatpush3.bf16.msra.mxu0 %v729_v13 }
  0x2d   : > { %691 = vmatpush3.bf16.msra.mxu1 %v738_v17 }
  0x2f   : > { %673 = vmatmul.mubr.bf16.vlgmr.msra.gmra.mxu0 %v730_v15 }
  0xef   : > { %v357_v18 = vpop.f32.mrf.mxu0 }
  0xf0   : > { %v364_v21 = vmax.f32 %v357_v18, 0.0 }
  0xf1   : > { %v674_v19 = vpop.f32.mrf.mxu0 }
  0xf3   : > { %v360_v20 = vpop.f32.mrf.mxu0 }
  0xf4   : > { %v365_v22 = vmax.f32 %v360_v20, 0.0 }
  0xf5   : > { %v675_v23 = vpop.f32.mrf.mxu0 }
  0xf6   : > { %v366_v24 = vpack.c.bf16 %v365_v22, %v364_v21 }
  0xf8   : > { %693 = vmatmul.mubr.bf16.vlgmr.msra.gmra.mxu1 %v366_v24 }
 0x1b8   : > { %v465_v25 = vpop.f32.mrf.mxu1 }
 0x1ba   : > { %v694_v26 = vpop.f32.mrf.mxu1 }
 0x1bc   : > { %v468_v27 = vpop.f32.mrf.mxu1 }
 0x1bd   : > { %v636_v28 = vpack.c.bf16 %v468_v27, %v465_v25 }
 0x1be   : > { %v695_v29 = vpop.f32.mrf.mxu1 }
 0x1bf   : > { %637 = vst [vmem:[%s248_s29] sm:$0xff] %v636_v28  }
 0x1c0 PF: > { %s13_s14 = sadd.s32 1, %s761_s14   ;;  %s859_s12 = smov %s757_s13 }
 0x1c1   : > { %p10_p5 = scmp.ge.s32.totalorder %s13_s14, 18   ;;  %s860_s13 = smov %s862_s15 }
 0x1c3   :  { %12 = sbr.rel (!%p10_p5) target bundleno = 2 (0x2), region = 68 }

</bundles_post_ra>
